<compile_context>
chip_gen: v5e
topology: v5e:2x2
jax: 0.10.0
libtpu: 0.0.40
codegen_flags: <defaults>
</compile_context>

<pallas_src>
import functools
import numpy as np
import jax
import jax.numpy as jnp
from jax import lax
from jax.experimental import pallas as pl
from jax.experimental.pallas import tpu as pltpu

# ----------------------------- model hyper-params (scaled-down) ----------------------
NUM_CLASSES = 32          # module default is 100; small synthetic size
CLS_PAD = 128             # lane-dense padded classifier width
BLANK_ID = 0
D_MODEL = 256             # stand-in for fusion_hidden_size=1024 / BiLSTM hidden 1024
H_ATT = 128               # stand-in for SpatialCorrelationModule hidden_dim=256
H_DIR = D_MODEL // 2      # per-direction LSTM hidden (BiLSTMLayer: hidden // num_dirs)
NUM_LSTM_LAYERS = 4
SKEL_HIDDEN = 64          # stand-in for skeleton_hidden_size=512
HAND_HIDDEN = 64          # stand-in for hand_hidden_size=512
HAND_FEATURE_SIZE = 50
CONV_K = 5
LN_EPS = 1e-5


def _vmem_limit_bytes():
    """Generation-aware scoped-VMEM limit: ~3/4 of physical, capped at 96 MiB."""
    try:
        cap = int(pltpu.get_tpu_info().vmem_capacity_bytes)
        return min((cap * 3) // 4, 96 * 1024 * 1024)
    except Exception:
        return 32 * 1024 * 1024        # conservative fallback (safe on all gens)


VMEM_LIMIT = _vmem_limit_bytes()


def _choose_tm(M):
    """Pick the largest M tile that divides M (weights stay resident)."""
    for tm in (1024, 512, 256, 128):
        if M >= tm and M % tm == 0:
            return tm
    return M          # single full block (always legal: equals full dim)


# ----------------------------- generic fused linear ----------------------------------
def _linear_kernel(x_ref, w_ref, b_ref, o_ref, *, act):
    y = jnp.dot(x_ref[...].astype(jnp.bfloat16), w_ref[...],
                preferred_element_type=jnp.float32) + b_ref[...]
    if act == "relu":
        y = jnp.maximum(y, 0.0)
    o_ref[...] = y.astype(o_ref.dtype)


def pallas_linear(x2d, w, b, act="none", out_dtype=jnp.float32):
    """x2d: [M, K] (any float dtype), w: [K, N] bf16, b: [N] f32 -> [M, N] out_dtype."""
    M, K = x2d.shape
    N = w.shape[1]
    tm = _choose_tm(M)
    kern = functools.partial(_linear_kernel, act=act)
    return pl.pallas_call(
        kern,
        out_shape=jax.ShapeDtypeStruct((M, N), out_dtype),
        grid=(M // tm,),
        in_specs=[
            pl.BlockSpec((tm, K), lambda i: (i, 0)),
            pl.BlockSpec((K, N), lambda i: (0, 0)),
            pl.BlockSpec((1, N), lambda i: (0, 0)),
        ],
        out_specs=pl.BlockSpec((tm, N), lambda i: (i, 0)),
        compiler_params=pltpu.CompilerParams(
            dimension_semantics=("parallel",), vmem_limit_bytes=VMEM_LIMIT),
    )(x2d, w, b.reshape(1, N))


# ------------------- fused dual-branch conv1d(k=5,'same') + relu + maxpool(2) --------
def _conv_relu_pool_kernel(x_ref, w_ref, b_ref, o_ref, tmp_ref, *, K, T):
    x = x_ref[0].astype(jnp.bfloat16)                         # [T+K-1, Cin]
    cout = w_ref.shape[-1]
    acc = jnp.zeros((T, cout), jnp.float32)
    for k in range(K):                                        # 5 shifted reads, no im2col
        acc = acc + jnp.dot(x[k:k + T, :], w_ref[k],
                            preferred_element_type=jnp.float32)
    tmp_ref[...] = jnp.maximum(acc + b_ref[...], 0.0)         # conv + bias + relu
    # fused maxpool(2) along time: pairwise max of even/odd rows (strided reads)
    T2 = T // 2
    even = tmp_ref[pl.ds(0, T2, stride=2), :]
    odd = tmp_ref[pl.ds(1, T2, stride=2), :]
    o_ref[0] = jnp.maximum(even, odd).astype(o_ref.dtype)


def conv1d_relu_pool(x_ntc, w, b):
    """x: [N, T, Cin], w: [K, Cin, Cout] bf16, b: [Cout] -> [N, T//2, Cout] bf16."""
    N, T, Cin = x_ntc.shape
    K, _, Cout = w.shape
    pad = K // 2
    T2 = T // 2
    xp = jnp.pad(x_ntc, ((0, 0), (pad, pad), (0, 0)))         # 1x copy (vs 5x im2col)
    kern = functools.partial(_conv_relu_pool_kernel, K=K, T=T)
    return pl.pallas_call(
        kern,
        out_shape=jax.ShapeDtypeStruct((N, T2, Cout), jnp.bfloat16),
        grid=(N,),
        in_specs=[
            pl.BlockSpec((1, T + 2 * pad, Cin), lambda n: (n, 0, 0)),
            pl.BlockSpec((K, Cin, Cout), lambda n: (0, 0, 0)),
            pl.BlockSpec((1, Cout), lambda n: (0, 0)),
        ],
        out_specs=pl.BlockSpec((1, T2, Cout), lambda n: (n, 0, 0)),
        scratch_shapes=[pltpu.VMEM((T, Cout), jnp.float32)],
        compiler_params=pltpu.CompilerParams(
            dimension_semantics=("parallel",), vmem_limit_bytes=VMEM_LIMIT),
    )(xp, w, b.reshape(1, Cout))


# ----------------------------- fused CNN head (fusion + cls head + QKV) ---------------
def _cnn_head_kernel(x_ref, wf_ref, bf_ref, wc_ref, bc_ref, wq_ref, bq_ref,
                     fused_ref, logit_ref, qkv_ref):
    x = x_ref[...].astype(jnp.bfloat16)
    fused = jnp.maximum(
        jnp.dot(x, wf_ref[...], preferred_element_type=jnp.float32) + bf_ref[...], 0.0)
    fb = fused.astype(jnp.bfloat16)
    fused_ref[...] = fb
    logit_ref[...] = jnp.dot(fb, wc_ref[...],
                             preferred_element_type=jnp.float32) + bc_ref[...]
    qkv_ref[...] = (jnp.dot(fb, wq_ref[...], preferred_element_type=jnp.float32)
                    + bq_ref[...]).astype(qkv_ref.dtype)


def cnn_head(x2d, p):
    """x2d: [M, Fin] bf16 -> (fused [M,D] bf16, padded cnn logits [M,128] f32,
    qkv [M, 3*H_ATT] bf16)."""
    M, Fin = x2d.shape
    tm = _choose_tm(M)
    const = lambda shape: pl.BlockSpec(shape, lambda i: (0, 0))
    return pl.pallas_call(
        _cnn_head_kernel,
        out_shape=(jax.ShapeDtypeStruct((M, D_MODEL), jnp.bfloat16),
                   jax.ShapeDtypeStruct((M, CLS_PAD), jnp.float32),
                   jax.ShapeDtypeStruct((M, 3 * H_ATT), jnp.bfloat16)),
        grid=(M // tm,),
        in_specs=[
            pl.BlockSpec((tm, Fin), lambda i: (i, 0)),
            const((Fin, D_MODEL)), const((1, D_MODEL)),
            const((D_MODEL, CLS_PAD)), const((1, CLS_PAD)),
            const((D_MODEL, 3 * H_ATT)), const((1, 3 * H_ATT)),
        ],
        out_specs=(pl.BlockSpec((tm, D_MODEL), lambda i: (i, 0)),
                   pl.BlockSpec((tm, CLS_PAD), lambda i: (i, 0)),
                   pl.BlockSpec((tm, 3 * H_ATT), lambda i: (i, 0))),
        compiler_params=pltpu.CompilerParams(
            dimension_semantics=("parallel",), vmem_limit_bytes=VMEM_LIMIT),
    )(x2d, p["fusion_w"], p["fusion_b"].reshape(1, -1),
      p["cnn_cls_w"], p["cnn_cls_b"].reshape(1, -1),
      p["attn"]["wqkv"], p["attn"]["bqkv"].reshape(1, -1))


# ----------------------------- SpatialCorrelationModule ------------------------------
def _attention_kernel(x_ref, qkv_ref, wo_ref, bo_ref, g_ref, be_ref, o_ref, *, eps):
    qkv = qkv_ref[0]                                               # [T, 3H] bf16
    H = qkv.shape[-1] // 3
    q = qkv[:, :H]                 # scale 1/sqrt(H) already folded into the Q weights
    k = qkv[:, H:2 * H]
    v = qkv[:, 2 * H:]
    # contract last dims of q,k directly (no explicit transpose)
    attn = lax.dot_general(q, k, (((1,), (1,)), ((), ())),
                           preferred_element_type=jnp.float32)     # [T, T]
    attn = attn - jnp.max(attn, axis=-1, keepdims=True)
    e = jnp.exp(attn)
    p = e * pl.reciprocal(jnp.sum(e, axis=-1, keepdims=True), approx=True)
    ctx = jnp.dot(p.astype(jnp.bfloat16), v, preferred_element_type=jnp.float32)
    out = jnp.dot(ctx.astype(jnp.bfloat16), wo_ref[...],
                  preferred_element_type=jnp.float32) + bo_ref[...]
    y = x_ref[0].astype(jnp.float32) + out                         # residual (f32)
    mean = jnp.mean(y, axis=-1, keepdims=True)
    var = jnp.mean((y - mean) ** 2, axis=-1, keepdims=True)
    y = (y - mean) * lax.rsqrt(var + eps) * g_ref[...] + be_ref[...]
    o_ref[0] = y.astype(o_ref.dtype)
    # TODO(synk): at real dims (T'>=512, D=1024) tile over query rows (flash-style) to
    # stay within v7x's 64 MiB VMEM; at this synthetic scale the full block fits.


def spatial_correlation(x_ntd, qkv_ntd, p):
    """Attention (scores/softmax/out-proj/residual/LN) on [N, T, D] bf16."""
    N, T, D = x_ntd.shape
    kern = functools.partial(_attention_kernel, eps=LN_EPS)
    const = lambda shape: pl.BlockSpec(shape, lambda b: (0, 0))
    return pl.pallas_call(
        kern,
        out_shape=jax.ShapeDtypeStruct((N, T, D), jnp.bfloat16),
        grid=(N,),
        in_specs=[
            pl.BlockSpec((1, T, D), lambda b: (b, 0, 0)),
            pl.BlockSpec((1, T, 3 * H_ATT), lambda b: (b, 0, 0)),
            const((H_ATT, D)), const((1, D)),
            const((1, D)), const((1, D)),
        ],
        out_specs=pl.BlockSpec((1, T, D), lambda b: (b, 0, 0)),
        compiler_params=pltpu.CompilerParams(
            dimension_semantics=("parallel",), vmem_limit_bytes=VMEM_LIMIT),
    )(x_ntd, qkv_ntd,
      p["wo"], p["bo"].reshape(1, -1),
      p["ln_g"].reshape(1, -1), p["ln_b"].reshape(1, -1))


# ----------------------------- BiLSTM layer (both directions fused) ------------------
def _bilstm_kernel(xp_ref, whh_ref, y_ref, *, T, H):
    # xp_ref : [T, N, 8H] f32 gate pre-activations (fwd 4H cols | bwd 4H cols)
    # whh_ref: [2, H, 4H] bf16 recurrent weights (fwd, bwd)
    # y_ref  : [T, N, 2H] bf16 output (fwd hidden cols | bwd hidden cols)
    n = xp_ref.shape[1]
    zero = jnp.zeros((n, H), jnp.float32)

    def cell(gates, c_prev):
        i_g = jax.nn.sigmoid(gates[:, 0 * H:1 * H])
        f_g = jax.nn.sigmoid(gates[:, 1 * H:2 * H])
        g_g = jnp.tanh(gates[:, 2 * H:3 * H])
        o_g = jax.nn.sigmoid(gates[:, 3 * H:4 * H])
        c_n = f_g * c_prev + i_g * g_g
        h_n = o_g * jnp.tanh(c_n)
        return h_n, c_n

    def step(i, carry):
        h_f, c_f, h_b, c_b = carry
        tf = i
        tb = T - 1 - i                      # backward direction via index, no HBM flip
        g_f = xp_ref[tf][:, :4 * H] + jnp.dot(
            h_f.astype(jnp.bfloat16), whh_ref[0], preferred_element_type=jnp.float32)
        g_b = xp_ref[tb][:, 4 * H:] + jnp.dot(
            h_b.astype(jnp.bfloat16), whh_ref[1], preferred_element_type=jnp.float32)
        h_f, c_f = cell(g_f, c_f)
        h_b, c_b = cell(g_b, c_b)
        y_ref[tf, :, :H] = h_f.astype(y_ref.dtype)
        y_ref[tb, :, H:] = h_b.astype(y_ref.dtype)
        return h_f, c_f, h_b, c_b

    lax.fori_loop(0, T, step, (zero, zero, zero, zero), unroll=min(4, T))
    # TODO(synk): at real dims keep xp in HBM (pl.ANY) and double-buffer per-timestep
    # slabs with pltpu.make_async_copy instead of holding the whole block resident.


def bilstm_layer(x_tnd, lp):
    """One bidirectional LSTM layer: [T, N, Din] -> [T, N, 2*H_DIR] bf16."""
    T, N, Din = x_tnd.shape
    H = H_DIR
    # one fused input projection for both directions: [T*N, Din] @ [Din, 8H] (f32 out)
    xp = pallas_linear(x_tnd.reshape(T * N, Din), lp["wih"], lp["b"]
                       ).reshape(T, N, 8 * H)
    kern = functools.partial(_bilstm_kernel, T=T, H=H)
    return pl.pallas_call(
        kern,
        out_shape=jax.ShapeDtypeStruct((T, N, 2 * H), jnp.bfloat16),
        grid=(1,),
        in_specs=[
            pl.BlockSpec((T, N, 8 * H), lambda i: (0, 0, 0)),
            pl.BlockSpec((2, H, 4 * H), lambda i: (0, 0, 0)),
        ],
        out_specs=pl.BlockSpec((T, N, 2 * H), lambda i: (0, 0, 0)),
        compiler_params=pltpu.CompilerParams(
            dimension_semantics=("arbitrary",), vmem_limit_bytes=VMEM_LIMIT),
    )(xp, lp["whh"])


# ----------------------------- parameter init (deterministic, synthetic) --------------
def _uniform(key, shape, scale):
    return jax.random.uniform(key, shape, jnp.float32, -scale, scale)


def _xavier(key, shape):
    lim = float(np.sqrt(6.0 / (shape[0] + shape[1])))
    return jax.random.uniform(key, shape, jnp.float32, -lim, lim)


def _pad_cols(w, width):
    return jnp.zeros((w.shape[0], width), jnp.float32).at[:, :w.shape[1]].set(w)


def init_params(key, cj_channels):
    keys = iter(jax.random.split(key, 64))
    nxt = lambda: next(keys)
    bf16 = lambda a: a.astype(jnp.bfloat16)
    p = {}

    # DualCNN stand-in, skel+hand branches fused block-diagonally (lane-dense 128 out)
    conv_in = cj_channels + HAND_FEATURE_SIZE
    cout = SKEL_HIDDEN + HAND_HIDDEN
    w1 = jnp.zeros((CONV_K, conv_in, cout), jnp.float32)
    w1 = w1.at[:, :cj_channels, :SKEL_HIDDEN].set(
        _uniform(nxt(), (CONV_K, cj_channels, SKEL_HIDDEN), 0.05))
    w1 = w1.at[:, cj_channels:, SKEL_HIDDEN:].set(
        _uniform(nxt(), (CONV_K, HAND_FEATURE_SIZE, HAND_HIDDEN), 0.05))
    w2 = jnp.zeros((CONV_K, cout, cout), jnp.float32)
    w2 = w2.at[:, :SKEL_HIDDEN, :SKEL_HIDDEN].set(
        _uniform(nxt(), (CONV_K, SKEL_HIDDEN, SKEL_HIDDEN), 0.05))
    w2 = w2.at[:, SKEL_HIDDEN:, SKEL_HIDDEN:].set(
        _uniform(nxt(), (CONV_K, HAND_HIDDEN, HAND_HIDDEN), 0.05))
    p["conv"] = dict(w1=bf16(w1), b1=jnp.zeros((cout,), jnp.float32),
                     w2=bf16(w2), b2=jnp.zeros((cout,), jnp.float32))

    p["fusion_w"] = bf16(_uniform(nxt(), (cout, D_MODEL), 0.05))
    p["fusion_b"] = jnp.zeros((D_MODEL,), jnp.float32)
    # cnn classifier head, lane-padded 32 -> 128
    p["cnn_cls_w"] = bf16(_pad_cols(_xavier(nxt(), (D_MODEL, NUM_CLASSES)), CLS_PAD))
    p["cnn_cls_b"] = jnp.zeros((CLS_PAD,), jnp.float32)

    # SpatialCorrelationModule: Q|K|V fused; 1/sqrt(H) scale folded into wq (q bias
    # is zero here, otherwise it would need scaling too).
    scale = H_ATT ** (-0.5)
    wq = _xavier(nxt(), (D_MODEL, H_ATT)) * scale
    wk = _xavier(nxt(), (D_MODEL, H_ATT))
    wv = _xavier(nxt(), (D_MODEL, H_ATT))
    p["attn"] = dict(
        wqkv=bf16(jnp.concatenate([wq, wk, wv], axis=1)),
        bqkv=jnp.zeros((3 * H_ATT,), jnp.float32),
        wo=bf16(_xavier(nxt(), (H_ATT, D_MODEL))),
        bo=jnp.zeros((D_MODEL,), jnp.float32),
        ln_g=jnp.ones((D_MODEL,), jnp.float32),
        ln_b=jnp.zeros((D_MODEL,), jnp.float32))

    # 4-layer bidirectional LSTM: fwd|bwd input proj fused, recurrent weights stacked.
    # TODO(synk): PyTorch nn.LSTM has separate bias_ih/bias_hh; a single combined bias
    # per direction is used for this synthetic stand-in.
    lstm = []
    s = 1.0 / float(np.sqrt(H_DIR))
    for _ in range(NUM_LSTM_LAYERS):
        wih_f = _uniform(nxt(), (D_MODEL, 4 * H_DIR), s)
        wih_b = _uniform(nxt(), (D_MODEL, 4 * H_DIR), s)
        whh_f = _uniform(nxt(), (H_DIR, 4 * H_DIR), s)
        whh_b = _uniform(nxt(), (H_DIR, 4 * H_DIR), s)
        b_f = _uniform(nxt(), (4 * H_DIR,), s)
        b_b = _uniform(nxt(), (4 * H_DIR,), s)
        lstm.append(dict(
            wih=bf16(jnp.concatenate([wih_f, wih_b], axis=1)),     # [D, 8H]
            b=jnp.concatenate([b_f, b_b], axis=0),                 # [8H]
            whh=bf16(jnp.stack([whh_f, whh_b], axis=0))))          # [2, H, 4H]
    p["lstm"] = lstm

    # final classifier: xavier weights, bias 0.5 everywhere, -3.0 at blank (matches
    # CNNBiLSTMModel._initialize_weights); lane-padded 32 -> 128.
    p["cls_w"] = bf16(_pad_cols(_xavier(nxt(), (D_MODEL, NUM_CLASSES)), CLS_PAD))
    cls_b = jnp.full((NUM_CLASSES,), 0.5, jnp.float32).at[BLANK_ID].set(-3.0)
    p["cls_b"] = jnp.zeros((CLS_PAD,), jnp.float32).at[:NUM_CLASSES].set(cls_b)
    return p


# ----------------------------- decode (host-side glue) --------------------------------
def greedy_decode(logits_tnc, lengths, blank_id=BLANK_ID):
    preds = np.asarray(jnp.argmax(logits_tnc, axis=-1))        # [T, N]
    results = []
    for n in range(preds.shape[1]):
        seq = preds[:int(lengths[n]), n]
        out, prev = [], -1
        for s in seq:
            if s != prev and s != blank_id:
                out.append(int(s))
            prev = s
        results.append(out)
    return results


# ----------------------------- full forward -------------------------------------------
def cnn_bilstm_forward(params, src_feature, spatial_feature, input_lengths,
                       mode="test", blank_id=BLANK_ID):
    N, C, T, J = src_feature.shape
    # PyTorch: permute(0,3,1,2).view(N, C*J, T); here -> channels-last [N, T, C*J]
    skel = jnp.transpose(src_feature, (0, 3, 1, 2)).reshape(N, C * J, T)
    skel = jnp.transpose(skel, (0, 2, 1)).astype(jnp.float32)
    hand = spatial_feature.astype(jnp.float32)                   # [N, T, 50]

    # --- DualCNNWithCTC stand-in --------------------------------------------------------
    # TODO(synk): cnn.DualCNNWithCTC internals are external to the reference module;
    # this is a documented stand-in (dual conv1d+pool branches -> fusion -> conv head),
    # with the two branches fused into one block-diagonal, lane-dense conv pipeline.
    x_in = jnp.concatenate([skel, hand], axis=-1)                # [N, T, C*J+50]
    cp = params["conv"]
    h1 = conv1d_relu_pool(x_in, cp["w1"], cp["b1"])              # [N, T/2, 128] bf16
    h2 = conv1d_relu_pool(h1, cp["w2"], cp["b2"])                # [N, T/4, 128] bf16
    Nb, Tp, Fin = h2.shape
    fused2d, logit_pad, qkv2d = cnn_head(h2.reshape(Nb * Tp, Fin), params)
    fused = fused2d.reshape(Nb, Tp, D_MODEL)                     # bf16
    cnn_logit = logit_pad[:, :NUM_CLASSES].reshape(Nb, Tp, NUM_CLASSES)
    cnn_logit = jnp.transpose(cnn_logit, (1, 0, 2))              # [T', N, num_classes]

    # calculate_updated_lengths: max(1, int(T' * length / T))  (host-side, not jitted)
    lens = np.asarray(input_lengths, dtype=np.float64)
    updated_lgt = np.maximum(1, np.floor(Tp * lens / T)).astype(np.int64)

    # --- SpatialCorrelationModule (QKV precomputed batched in cnn_head) ----------------
    qkv = qkv2d.reshape(Nb, Tp, 3 * H_ATT)
    cnn_out_ntd = spatial_correlation(fused, qkv, params["attn"])   # [N, T', D] bf16
    cnn_out = jnp.transpose(cnn_out_ntd, (1, 0, 2))                 # [T', N, D]

    # --- temporal model: 4-layer bidirectional LSTM ------------------------------------
    h = cnn_out
    for lp in params["lstm"]:
        h = bilstm_layer(h, lp)                                  # [T', N, D_MODEL] bf16

    # --- classifier (lane-padded output, sliced back) ----------------------------------
    Tq, Nq, Dq = h.shape
    out_pad = pallas_linear(h.reshape(Tq * Nq, Dq), params["cls_w"], params["cls_b"])
    outputs = out_pad[:, :NUM_CLASSES].reshape(Tq, Nq, NUM_CLASSES)

    if mode == "test":
        outputs = outputs.at[:, :, blank_id].add(-5.0)
        cnn_logit = cnn_logit.at[:, :, blank_id].add(-5.0)
        pred = greedy_decode(outputs, updated_lgt, blank_id)
        conv_pred = greedy_decode(cnn_logit, updated_lgt, blank_id)
        return pred, conv_pred, outputs
    # TODO(synk): training branch needs torch.nn.CTCLoss + SeqKD distillation
    # (external criterions); not translatable to a Pallas kernel here.
    return outputs


# ----------------------------- main ----------------------------------------------------
if __name__ == "__main__":
    key = jax.random.PRNGKey(0)
    k_src, k_sp, k_par = jax.random.split(key, 3)

    N, C, T, J = 2, 4, 16, 4
    src_feature = jax.random.normal(k_src, (N, C, T, J), jnp.float32)
    spatial_feature = jax.random.normal(k_sp, (N, T, HAND_FEATURE_SIZE), jnp.float32)
    input_lengths = np.array([16, 12], dtype=np.int64)

    params = init_params(k_par, C * J)

    pred, conv_pred, outputs = cnn_bilstm_forward(
        params, src_feature, spatial_feature, input_lengths, mode="test")
    jax.block_until_ready(outputs)

    assert outputs.shape == (T // 4, N, NUM_CLASSES)
    assert np.all(np.isfinite(np.asarray(outputs)))
    print("KERNEL_OK")
</pallas_src>

<mosaic_0001>
module attributes {stable_mosaic.version = 11 : i64} {
  func.func @_conv_relu_pool_kernel(%arg0: i32, %arg1: memref<1x20x66xf32, #tpu.memory_space<vmem>>, %arg2: memref<5x66x128xbf16, #tpu.memory_space<vmem>>, %arg3: memref<1x128xf32, #tpu.memory_space<vmem>>, %arg4: memref<1x8x128xbf16, #tpu.memory_space<vmem>>, %arg5: memref<16x128xf32, #tpu.memory_space<vmem>>) attributes {dimension_semantics = [#tpu.dimension_semantics<parallel>], iteration_bounds = array<i64: 2>, scalar_prefetch = 0 : i64, scratch_operands = 1 : i64, tpu.core_type = #tpu.core_type<tc>, window_params = [{transform_indices = @transform_0, window_bounds = array<i64: 1, 20, 66>}, {pipeline_mode = #tpu.pipeline_mode<synchronous>, transform_indices = @transform_1, window_bounds = array<i64: 5, 66, 128>}, {pipeline_mode = #tpu.pipeline_mode<synchronous>, transform_indices = @transform_2, window_bounds = array<i64: 1, 128>}, {transform_indices = @transform_3, window_bounds = array<i64: 1, 8, 128>}]} {
    %c0 = arith.constant 0 : index
    %c0_0 = arith.constant 0 : index
    %c0_1 = arith.constant 0 : index
    %0 = vector.load %arg1[%c0, %c0_0, %c0_1] : memref<1x20x66xf32, #tpu.memory_space<vmem>>, vector<1x20x66xf32>
    %1 = vector.shape_cast %0 : vector<1x20x66xf32> to vector<20x66xf32>
    %2 = arith.truncf %1 : vector<20x66xf32> to vector<20x66xbf16>
    %cst = arith.constant 0.000000e+00 : f32
    %3 = vector.broadcast %cst : f32 to vector<16x128xf32>
    %4 = vector.extract_strided_slice %2 {offsets = [0, 0], sizes = [16, 66], strides = [1, 1]} : vector<20x66xbf16> to vector<16x66xbf16>
    %c0_2 = arith.constant 0 : index
    %c0_3 = arith.constant 0 : index
    %c0_4 = arith.constant 0 : index
    %5 = vector.load %arg2[%c0_2, %c0_3, %c0_4] : memref<5x66x128xbf16, #tpu.memory_space<vmem>>, vector<1x66x128xbf16>
    %6 = vector.shape_cast %5 : vector<1x66x128xbf16> to vector<66x128xbf16>
    %cst_5 = arith.constant dense<0.000000e+00> : vector<16x128xf32>
    %7 = tpu.matmul %4, %6, %cst_5 {dimension_numbers = #tpu.dot_dimension_numbers<[1], [0], [0], [1], [0, 0, 1, 1], [], []>} : vector<16x66xbf16>, vector<66x128xbf16>, vector<16x128xf32> -> vector<16x128xf32>
    %8 = arith.addf %3, %7 : vector<16x128xf32>
    %9 = vector.extract_strided_slice %2 {offsets = [1, 0], sizes = [16, 66], strides = [1, 1]} : vector<20x66xbf16> to vector<16x66xbf16>
    %c1 = arith.constant 1 : index
    %c0_6 = arith.constant 0 : index
    %c0_7 = arith.constant 0 : index
    %10 = vector.load %arg2[%c1, %c0_6, %c0_7] : memref<5x66x128xbf16, #tpu.memory_space<vmem>>, vector<1x66x128xbf16>
    %11 = vector.shape_cast %10 : vector<1x66x128xbf16> to vector<66x128xbf16>
    %cst_8 = arith.constant dense<0.000000e+00> : vector<16x128xf32>
    %12 = tpu.matmul %9, %11, %cst_8 {dimension_numbers = #tpu.dot_dimension_numbers<[1], [0], [0], [1], [0, 0, 1, 1], [], []>} : vector<16x66xbf16>, vector<66x128xbf16>, vector<16x128xf32> -> vector<16x128xf32>
    %13 = arith.addf %8, %12 : vector<16x128xf32>
    %14 = vector.extract_strided_slice %2 {offsets = [2, 0], sizes = [16, 66], strides = [1, 1]} : vector<20x66xbf16> to vector<16x66xbf16>
    %c2 = arith.constant 2 : index
    %c0_9 = arith.constant 0 : index
    %c0_10 = arith.constant 0 : index
    %15 = vector.load %arg2[%c2, %c0_9, %c0_10] : memref<5x66x128xbf16, #tpu.memory_space<vmem>>, vector<1x66x128xbf16>
    %16 = vector.shape_cast %15 : vector<1x66x128xbf16> to vector<66x128xbf16>
    %cst_11 = arith.constant dense<0.000000e+00> : vector<16x128xf32>
    %17 = tpu.matmul %14, %16, %cst_11 {dimension_numbers = #tpu.dot_dimension_numbers<[1], [0], [0], [1], [0, 0, 1, 1], [], []>} : vector<16x66xbf16>, vector<66x128xbf16>, vector<16x128xf32> -> vector<16x128xf32>
    %18 = arith.addf %13, %17 : vector<16x128xf32>
    %19 = vector.extract_strided_slice %2 {offsets = [3, 0], sizes = [16, 66], strides = [1, 1]} : vector<20x66xbf16> to vector<16x66xbf16>
    %c3 = arith.constant 3 : index
    %c0_12 = arith.constant 0 : index
    %c0_13 = arith.constant 0 : index
    %20 = vector.load %arg2[%c3, %c0_12, %c0_13] : memref<5x66x128xbf16, #tpu.memory_space<vmem>>, vector<1x66x128xbf16>
    %21 = vector.shape_cast %20 : vector<1x66x128xbf16> to vector<66x128xbf16>
    %cst_14 = arith.constant dense<0.000000e+00> : vector<16x128xf32>
    %22 = tpu.matmul %19, %21, %cst_14 {dimension_numbers = #tpu.dot_dimension_numbers<[1], [0], [0], [1], [0, 0, 1, 1], [], []>} : vector<16x66xbf16>, vector<66x128xbf16>, vector<16x128xf32> -> vector<16x128xf32>
    %23 = arith.addf %18, %22 : vector<16x128xf32>
    %24 = vector.extract_strided_slice %2 {offsets = [4, 0], sizes = [16, 66], strides = [1, 1]} : vector<20x66xbf16> to vector<16x66xbf16>
    %c4 = arith.constant 4 : index
    %c0_15 = arith.constant 0 : index
    %c0_16 = arith.constant 0 : index
    %25 = vector.load %arg2[%c4, %c0_15, %c0_16] : memref<5x66x128xbf16, #tpu.memory_space<vmem>>, vector<1x66x128xbf16>
    %26 = vector.shape_cast %25 : vector<1x66x128xbf16> to vector<66x128xbf16>
    %cst_17 = arith.constant dense<0.000000e+00> : vector<16x128xf32>
    %27 = tpu.matmul %24, %26, %cst_17 {dimension_numbers = #tpu.dot_dimension_numbers<[1], [0], [0], [1], [0, 0, 1, 1], [], []>} : vector<16x66xbf16>, vector<66x128xbf16>, vector<16x128xf32> -> vector<16x128xf32>
    %28 = arith.addf %23, %27 : vector<16x128xf32>
    %c0_18 = arith.constant 0 : index
    %c0_19 = arith.constant 0 : index
    %29 = vector.load %arg3[%c0_18, %c0_19] : memref<1x128xf32, #tpu.memory_space<vmem>>, vector<1x128xf32>
    %30 = vector.broadcast %29 : vector<1x128xf32> to vector<16x128xf32>
    %31 = arith.addf %28, %30 : vector<16x128xf32>
    %cst_20 = arith.constant 0.000000e+00 : f32
    %32 = vector.broadcast %cst_20 : f32 to vector<16x128xf32>
    %33 = arith.maximumf %31, %32 : vector<16x128xf32>
    %c0_21 = arith.constant 0 : index
    %c0_22 = arith.constant 0 : index
    %34 = vector.load %arg5[%c0_21, %c0_22] : memref<16x128xf32, #tpu.memory_space<vmem>>, vector<16x128xf32>
    tpu.vector_store %arg5[%c0_21, %c0_22], %33 {strides = array<i32>} : memref<16x128xf32, #tpu.memory_space<vmem>>, vector<16x128xf32>,
    %c0_23 = arith.constant 0 : index
    %c0_24 = arith.constant 0 : index
    %35 = tpu.strided_load %arg5[%c0_23, %c0_24] {strides = array<i32: 2, 1>} : memref<16x128xf32, #tpu.memory_space<vmem>>, vector<8x128xf32>
    %c1_25 = arith.constant 1 : index
    %c0_26 = arith.constant 0 : index
    %36 = tpu.strided_load %arg5[%c1_25, %c0_26] {strides = array<i32: 2, 1>} : memref<16x128xf32, #tpu.memory_space<vmem>>, vector<8x128xf32>
    %37 = arith.maximumf %35, %36 : vector<8x128xf32>
    %38 = arith.truncf %37 : vector<8x128xf32> to vector<8x128xbf16>
    %c0_27 = arith.constant 0 : index
    %c0_28 = arith.constant 0 : index
    %c0_29 = arith.constant 0 : index
    %39 = vector.load %arg4[%c0_27, %c0_28, %c0_29] : memref<1x8x128xbf16, #tpu.memory_space<vmem>>, vector<1x8x128xbf16>
    %40 = vector.shape_cast %39 : vector<1x8x128xbf16> to vector<8x128xbf16>
    %41 = vector.shape_cast %38 : vector<8x128xbf16> to vector<1x8x128xbf16>
    tpu.vector_store %arg4[%c0_27, %c0_28, %c0_29], %41 {strides = array<i32>} : memref<1x8x128xbf16, #tpu.memory_space<vmem>>, vector<1x8x128xbf16>,
    return
  }
  func.func @transform_0(%arg0: i32) -> (i32, i32, i32) {
    %c0_i32 = arith.constant 0 : i32
    %c0_i32_0 = arith.constant 0 : i32
    %c0_i32_1 = arith.constant 0 : i32
    return %arg0, %c0_i32, %c0_i32_0 : i32, i32, i32
  }
  func.func @transform_1(%arg0: i32) -> (i32, i32, i32) {
    %c0_i32 = arith.constant 0 : i32
    %c0_i32_0 = arith.constant 0 : i32
    %c0_i32_1 = arith.constant 0 : i32
    %c0_i32_2 = arith.constant 0 : i32
    return %c0_i32, %c0_i32_0, %c0_i32_1 : i32, i32, i32
  }
  func.func @transform_2(%arg0: i32) -> (i32, i32) {
    %c0_i32 = arith.constant 0 : i32
    %c0_i32_0 = arith.constant 0 : i32
    %c0_i32_1 = arith.constant 0 : i32
    return %c0_i32, %c0_i32_0 : i32, i32
  }
  func.func @transform_3(%arg0: i32) -> (i32, i32, i32) {
    %c0_i32 = arith.constant 0 : i32
    %c0_i32_0 = arith.constant 0 : i32
    %c0_i32_1 = arith.constant 0 : i32
    return %arg0, %c0_i32, %c0_i32_0 : i32, i32, i32
  }
}

</mosaic_0001>

<bundles_post_ra>
// kernel: tpu_custom_call.1
= control target key start
LH: loop header
LB: loop body
LE: loop exit
PB: predicated region body
PF: predicated region fallthrough
CT: control target
= control target key end

     0   :  { %8 = vsyncpa [#allocation4], 0  ;;  %s1040_s0 = inlined_call_operand.vmem [shape: f32[2,20,66], index: 0, kind: input, shape index: {}]   ;;  %s1041_s1 = inlined_call_operand.hbm [shape: bf16[5,66,128], index: 1, kind: input, shape index: {}]   ;;  %s1042_s2 = inlined_call_operand.vmem [shape: f32[1,128], index: 2, kind: input, shape index: {}]   ;;  %s1043_s3 = inlined_call_operand.hbm [shape: bf16[2,8,128], index: 3, kind: output, shape index: {}]  }
   0x1   :  { %9 = vsyncpa [#allocation5], 0 }
   0x2   :  { %11 = vsyncpa [#allocation5 + $0x1], 0  ;;  %s918_s12 = smov 0   ;;  %s920_s13 = smov 0  }
   0x3   :  { %s922_s14 = smov 0   ;;  %s924_s15 = smov 0  }
   0x4 LB: > { %s939_s16 = sadd.s32 4294967295, %s893_s15   ;;  %s626_s17 = sadd.s32 4294967294, %s893_s15   ;;  %s893_s15 = sphi %s924_s15, %s1049_s15   ;;  %s889_s14 = sphi %s922_s14, %s1048_s14   ;;  %s885_s13 = sphi %s920_s13, %s1047_s13   ;;  %s881_s12 = sphi %s918_s12, %s1046_s12  }
   0x5   : > { %s943_s18 = sadd.s32 1, %s893_s15   ;;  %s92_s19 = sadd.s32 1, %s889_s14 }
   0x6   : > { %s89_s20 = ssub.s32 %s893_s15, %s943_s18  ;;  %p102_p0 = scmp.ne.s32.totalorder %s889_s14, %s885_s13 }
   0x7   : > { %p90_p1 = scmp.eq.s32.totalorder %s89_s20, 0  ;;  %p103_p2 = scmp.eq.s32.totalorder %s939_s16, 1 }
   0x8   : > { %p108_p3 = scmp.ne.s32.totalorder %s885_s13, %s881_s12  ;;  %p109_p4 = scmp.eq.s32.totalorder %s626_s17, 1 }
   0x9   : > { %s954_s21 = scalar_select %p90_p1, %s889_s14, %s92_s19  }
   0xa   : > { %p956_p5 = por %p103_p2, %p102_p0  ;;  %p960_p6 = por %p109_p4, %p108_p3 }
   0xb   : > { %p627_p7 = scmp.ge.s32.totalorder %s893_s15, 1  ;;  %p116_p8 = scmp.lt.s32.totalorder %s893_s15, 3 }
   0xc   : > { %p758_p9 = scmp.eq.s32.totalorder %s939_s16, 0  ;;  %s127_s26 = sshll.u32 %s1041_s1, 4  ;;  %s128_s26 = int_to_ptr.hbm [resolvable:$true] %s127_s26 }
   0xd   : > { %p117_p10 = pnand %p627_p7, %p116_p8  ;;  %s895_s27 = smov [#allocation3]  }
   0xe   : > { %s129_s28 = sshll.u32 %s895_s27, 4  ;;  %s896_s29 = smov 64   ;;  %s130_s28 = int_to_ptr.vmem [resolvable:$true] %s129_s28 }
   0xf   : > { %p750_p11 = pneg %p117_p10  ;;  %s897_s30 = smov 4  }
  0x10   : > { %156 = sbr.rel (%p117_p10) target bundleno = 222 (0xde), region = 32 }
  0x11   : > { %p751_p12 = pnand %p758_p9, %p750_p11 }
  0x13   : > { %753 = dma.hbm_to_vmem [thread:$0]  (!%p751_p12), %s128_s26, 2880, %s130_s28, [#allocation4], %s896_s29, %s896_s29, %s897_s30  }
  0x15   : > { %872 = dma.done.wait (%p758_p9), [#allocation4], 2880  }
  0x16   : > { %874 = vsyncadd (%p758_p9), [#allocation4], 4294964416  ;;  %p181_p13 = scmp.lt.s32.totalorder %s939_s16, 1  ;;  %v211_v0 = vld [vmem:[#allocation3 + $0x44] sm:$0x1]  ;;  %vm264_vm0 = vcmask 1040384  }
  0x17   : > { %v201_v1 = vld [vmem:[#allocation3 + $0x20] sm:$0x1]  ;;  %v337_v2 = vld [vmem:[#allocation3 + $0x68] sm:$0x1]  ;;  %v250_v3 = vunpack.c.l.b16 %v211_v0  ;;  %v400_v6 = vld [vmem:[#allocation3 + $0x8c] sm:$0x1] }
  0x18   : > { %s182_s4 = scalar_select %p181_p13, %s939_s16, 1  ;;  %v299_v4 = vunpack.c.l.b16 %v201_v1  ;;  %v359_v5 = vunpack.c.l.b16 %v337_v2  ;;  %v428_v7 = vunpack.c.l.b16 %v400_v6  ;;  %v730_v15 = vld [vmem:[#allocation3 + $0x3c] sm:$0xff]  ;;  %v738_v19 = vld [vmem:[#allocation3 + $0x84] sm:$0xff]  ;;  %v729_v26 = vld [vmem:[#allocation3 + $0x34] sm:$0xff]  ;;  %vm220_vm1 = vsmask.f32 7424 }
  0x19   : > { %v255_v8 = vpack.c.b16 %v250_v3, %v250_v3  ;;  %v726_v17 = vld [vmem:[#allocation3 + $0x18] sm:$0xff]  ;;  %v734_v18 = vld [vmem:[#allocation3 + $0x60] sm:$0xff]  ;;  %v725_v27 = vld [vmem:[#allocation3 + $0x10] sm:$0xff]  ;;  %vm338_vm2 = vcmask 1046528   ;;  %vm401_vm3 = vsmask.f32 6400 }
  0x1a   : > { %s743_s5 = smul.u32 24, %s182_s4  ;;  %v304_v9 = vpack.c.b16 %v299_v4, %v299_v4  ;;  %v364_v10 = vpack.c.b16 %v359_v5, %v359_v5  ;;  %v433_v11 = vpack.c.b16 %v428_v7, %v428_v7  ;;  %v469_v28 = vld [vmem:[#allocation3 + $0xb0] sm:$0x1]  ;;  %v733_v32 = vld [vmem:[#allocation3 + $0x58] sm:$0xff]  ;;  %v724_v38 = vld [vmem:[#allocation3 + $0x8] sm:$0xff]  ;;  %vm260_vm4 = vcmask 539648  }
  0x1b   : > { %v266_v12 = vsel %vm264_vm0, %v255_v8, 0  ;;  %v737_v33 = vld [vmem:[#allocation3 + $0x7c] sm:$0xff]  ;;  %v491_v36 = vunpack.c.l.b16 %v469_v28  ;;  %v728_v37 = vld [vmem:[#allocation3 + $0x2c] sm:$0xff]  ;;  %v736_v43 = vld [vmem:[#allocation3 + $0x74] sm:$0xff]  ;;  %vm470_vm5 = vcmask 1045504   ;;  %s178_s11 = sand.u32 1, %s885_s13  }
  0x1c   : > { %s185_s8 = scalar_lea.vmem %s1040_s0, %s743_s5  ;;  %v312_v13 = vsel %vm264_vm0, %v304_v9, 0  ;;  %v373_v14 = vsel %vm264_vm0, %v364_v10, 0  ;;  %271 = vmatpush.bf16.msra.mxu0 %v266_v12  ;;  %v442_v16 = vsel %vm264_vm0, %v433_v11, 0  ;;  %v732_v42 = vld [vmem:[#allocation3 + $0x50] sm:$0xff]  ;;  %v727_v51 = vld [vmem:[#allocation3 + $0x24] sm:$0xff]  ;;  %v740_v3 = vld [vmem:[#allocation3 + $0x98] sm:$0xff] }
  0x1d   : > { %317 = vmatpush.bf16.msra.mxu1 %v312_v13  ;;  %378 = vmatpush.bf16.msra.mxu2 %v373_v14  ;;  %v187_v20 = vld [vmem:[%s185_s8] sm:$0xff]  ;;  %v188_v21 = vld [vmem:[%s185_s8 + $0x8] sm:$0xff]  ;;  %v189_v22 = vld [vmem:[%s185_s8 + $0x10] sm:$0xf]  ;;  %v496_v48 = vpack.c.b16 %v491_v36, %v491_v36  ;;  %s632_s17 = sshll.u32 %s178_s11, 2  ;;  %s720_s19 = sshll.u32 %s939_s16, 2 }
  0x1e   : > { %447 = vmatpush.bf16.msra.mxu3 %v442_v16  ;;  %v190_v23 = vpack.c.bf16 %v187_v20, %v187_v20  ;;  %v191_v24 = vpack.c.bf16 %v188_v21, %v188_v21  ;;  %v192_v25 = vpack.c.bf16 %v189_v22, %v189_v22  ;;  %v723_v52 = vld [vmem:[#allocation3] sm:$0xff]  ;;  %v731_v55 = vld [vmem:[#allocation3 + $0x48] sm:$0xff]  ;;  %v739_v4 = vld [vmem:[#allocation3 + $0x90] sm:$0xff]  ;;  %s550_s25 = scalar_lea.hbm %s1043_s3, %s720_s19  ;;  %s180_s26 = scalar_lea.vmem [#allocation6], %s632_s17 }
  0x1f   : > { %v735_v56 = vld [vmem:[#allocation3 + $0x6c] sm:$0xff]  ;;  %v505_v61 = vsel %vm264_vm0, %v496_v48, 0  ;;  %v741_v2 = vld [vmem:[#allocation3 + $0xa0] sm:$0xff]  ;;  %s552_s27 = sshll.u32 %s180_s26, 4  ;;  %s554_s28 = sshll.u32 %s550_s25, 4  ;;  %s553_s27 = int_to_ptr.vmem [resolvable:$true] %s552_s27  ;;  %s555_s28 = int_to_ptr.hbm [resolvable:$true] %s554_s28 }
  0x20   : > { %272 = vmatpush.bf16.msra.mxu0 %v730_v15  ;;  %v215_v29 = vunpack.c.l.b16 %v190_v23  ;;  %v216_v30 = vunpack.c.l.b16 %v191_v24  ;;  %v217_v31 = vunpack.c.l.b16 %v192_v25  ;;  %v742_v1 = vld [vmem:[#allocation3 + $0xa8] sm:$0xff]  ;;  %s540_s29 = scalar_lea.sflag [#allocation5], %s178_s11  ;;  %s841_s30 = sshra.s32 %s555_s28, 4  ;;  %s842_s30 = int_to_ptr.hbm [resolvable:$true] %s841_s30 }
  0x21   : > { %318 = vmatpush.bf16.msra.mxu1 %v726_v17  ;;  %379 = vmatpush.bf16.msra.mxu2 %v734_v18  ;;  %v796_v17 = vld [vmem:[%s1042_s2] ss:$0 sm:$0xff]  ;;  %s843_s4 = scalar_lea.hbm %s842_s30, 4  ;;  %s847_s6 = scalar_lea.hbm %s1043_s3, 8 }
  0x22   : > { %448 = vmatpush.bf16.msra.mxu3 %v738_v19  ;;  %v985_v34 = vpack.c.b16 %v216_v30, %v215_v29  ;;  %v987_v35 = vpack.c.b16 %v217_v31, %v217_v31  ;;  %p844_p0 = scmp.ne.s32.totalorder %s842_s30, %s843_s4  ;;  %p848_p3 = scmp.lt.s32.totalorder %s842_s30, %s1043_s3 }
  0x23   : > { %p849_p4 = scmp.lt.s32.totalorder %s847_s6, %s843_s4 }
  0x24   : > { %273 = vmatpush.bf16.msra.mxu0 %v729_v26  ;;  %v222_v39 = vshrl.u32 %v985_v34, 16  ;;  %v224_v40 = vshll.u32 %v985_v34, 16  ;;  %v229_v41 = vshll.u32 %v987_v35, 16  ;;  %v405_v44 = vshrl.u32 %v987_v35, 16  ;;  %p845_p1 = pnand %p844_p0, %p956_p5 }
  0x25   : > { %319 = vmatpush.bf16.msra.mxu1 %v725_v27  ;;  %380 = vmatpush.bf16.msra.mxu2 %v733_v32  ;;  %v339_v57 = vrot.slane %v985_v34, 1  ;;  %v340_v58 = vrot.slane %v987_v35, 1  ;;  %v471_v5 = vrot.slane %v985_v34, 2  ;;  %v472_v6 = vrot.slane %v987_v35, 2  ;;  %p850_p7 = por %p849_p4, %p848_p3 }
  0x26   : > { %449 = vmatpush.bf16.msra.mxu3 %v737_v33  ;;  %v226_v45 = vrot.slane %v224_v40, 1  ;;  %v402_v46 = vrot.slane %v222_v39, 1  ;;  %v403_v47 = vrot.slane %v224_v40, 2  ;;  %v407_v49 = vrot.slane %v405_v44, 1  ;;  %p846_p2 = pneg %p845_p1 }
  0x27   : > { %v408_v50 = vrot.slane %v229_v41, 2  ;;  %v231_v54 = vrot.slane %v229_v41, 1  ;;  %v341_v63 = vsel %vm338_vm2, %v339_v57, %v340_v58  ;;  %v473_v7 = vsel %vm470_vm5, %v471_v5, %v472_v6 }
  0x28   : > { %274 = vmatpush.bf16.msra.mxu0 %v728_v37  ;;  %v227_v53 = vor.u32 %v226_v45, %v222_v39  ;;  %v404_v59 = vor.u32 %v403_v47, %v402_v46  ;;  %p851_p8 = pnand %p850_p7, %p846_p2 }
  0x29   : > { %320 = vmatpush.bf16.msra.mxu1 %v724_v38  ;;  %381 = vmatpush.bf16.msra.mxu2 %v732_v42  ;;  %v409_v60 = vor.u32 %v408_v50, %v407_v49 }
  0x2a   : > { %450 = vmatpush.bf16.msra.mxu3 %v736_v43  ;;  %v232_v62 = vsel %vm220_vm1, %v227_v53, %v231_v54 }
  0x2b   : > { %v410_v0 = vsel %vm401_vm3, %v404_v59, %v409_v60 }
  0x2c   : > { %275 = vmatpush.bf16.msra.mxu0 %v727_v51 }
  0x2d   : > { %321 = vmatpush.bf16.msra.mxu1 %v723_v52  ;;  %382 = vmatpush.bf16.msra.mxu2 %v731_v55 }
  0x2e   : > { %451 = vmatpush.bf16.msra.mxu3 %v735_v56 }
  0x2f   : > { %650 = vmatmul.msk.bf16.vlgmr.msra.gmra.mxu0 %vm260_vm4, %v232_v62 }
  0x30   : > { %510 = vmatpush.bf16.msrb.mxu0 %v505_v61  ;;  %667 = vmatmul.msk.bf16.vlgmr.msra.gmra.mxu1 %vm260_vm4, %v985_v34 }
  0x31   : > { %684 = vmatmul.msk.bf16.vlgmr.msra.gmra.mxu2 %vm260_vm4, %v341_v63  ;;  %701 = vmatmul.msk.bf16.vlgmr.msra.gmra.mxu3 %vm260_vm4, %v410_v0 }
  0x34   : > { %511 = vmatpush.bf16.msrb.mxu0 %v742_v1 }
  0x38   : > { %512 = vmatpush.bf16.msrb.mxu0 %v741_v2 }
  0x3c   : > { %513 = vmatpush.bf16.msrb.mxu0 %v740_v3 }
  0x40   : > { %514 = vmatpush.bf16.msrb.mxu0 %v739_v4 }
  0x43   : > { %718 = vmatmul.msk.bf16.vlgmr.msrb.gmra.mxu0 %vm260_vm4, %v473_v7 }
  0xac   : > { %v277_v8 = vpop.f32.mrf.mxu0 }
  0xad   : > { %v323_v9 = vpop.f32.mrf.mxu1 }
  0xae   : > { %v324_v12 = vadd.f32 %v323_v9, %v277_v8 }
  0xb4   : > { %v384_v10 = vpop.f32.mrf.mxu2  ;;  %v279_v11 = vpop.f32.mrf.mxu0 }
  0xb5   : > { %v453_v13 = vpop.f32.mrf.mxu3  ;;  %v389_v14 = vadd.f32 %v384_v10, %v324_v12  ;;  %v325_v15 = vpop.f32.mrf.mxu1 }
  0xb6   : > { %v326_v20 = vadd.f32 %v325_v15, %v279_v11 }
  0xb7   : > { %v458_v16 = vadd.f32 %v453_v13, %v389_v14 }
  0xbc   : > { %v386_v18 = vpop.f32.mrf.mxu2 }
  0xbd   : > { %v390_v22 = vadd.f32 %v386_v18, %v326_v20  ;;  %v455_v24 = vpop.f32.mrf.mxu3 }
  0xbf   : > { %v459_v26 = vadd.f32 %v455_v24, %v390_v22 }
  0xc0   : > { %v516_v19 = vpop.f32.mrf.mxu0 }
  0xc1   : > { %v521_v21 = vadd.f32 %v516_v19, %v458_v16 }
  0xc3   : > { %v527_v23 = vadd.f32 %v796_v17, %v521_v21 }
  0xc5   : > { %v529_v25 = vmax.f32 %v527_v23, 0.0 }
  0xc7   : > { %531 = vst [vmem:[#allocation2] sm:$0xff] %v529_v25 }
  0xc8   : > { %v518_v27 = vpop.f32.mrf.mxu0 }
  0xc9   : > { %v522_v28 = vadd.f32 %v518_v27, %v459_v26 }
  0xcb   : > { %v528_v29 = vadd.f32 %v796_v17, %v522_v28 }
  0xcd   : > { %v530_v30 = vmax.f32 %v528_v29, 0.0 }
  0xcf   : > { %532 = vst [vmem:[#allocation2 + $0x8] sm:$0xff] %v530_v30 }
  0xd6   : > { %v533_v31 = vld [vmem:[#allocation2] ss:$2 sm:$0xff]  ;;  %v535_v32 = vld [vmem:[#allocation2 + $0x1] ss:$2 sm:$0xff] }
  0xd7   : > { %v536_v33 = vmax.f32 %v533_v31, %v535_v32 }
  0xd9   : > { %v537_v34 = vpack.c.bf16 %v536_v33, %v536_v33 }
  0xdb   : > { %538 = vst [vmem:[%s180_s26] sm:$0xf] %v537_v34 }
  0xdc   : > { %854 = shalt.err (!%p851_p8)
}
  0xdd   : > { %748 = dma.vmem_to_hbm [thread:$0]  (%p956_p5), %s553_s27, 64, %s555_s28, %s540_s29  }
  0xde PF: > { %p760_p9 = scmp.ge.s32.totalorder %s893_s15, 2  ;;  %s566_s9 = sand.u32 1, %s881_s12  }
  0xdf   : > { %s567_s10 = scalar_lea.sflag [#allocation5], %s566_s9 }
  0xe0   : > { %p755_p10 = pnand %p760_p9, %p960_p6 }
  0xe2   : > { %p756_p11 = pneg %p755_p10 }
  0xe4   : > { %876 = dma.done.wait (%p756_p11), %s567_s10, 64  }
  0xe5   : > { %878 = vsyncadd (%p756_p11), %s567_s10, 4294967232  ;;  %p14_p12 = scmp.ge.s32.totalorder %s943_s18, 4   ;;  %s1046_s12 = smov %s885_s13 }
  0xe6   : > { %s1047_s13 = smov %s889_s14  ;;  %s1048_s14 = smov %s954_s21 }
  0xe7   : > { %s1049_s15 = smov %s943_s18  ;;  %16 = sbr.rel (!%p14_p12) target bundleno = 4 (0x4), region = 77 }
  0xec   :  { %573 = vsyncpa [#allocation4], 1 }
  0xed   :  { %575 = vsyncpa [#allocation4 + $0x1], 1 }
  0xee   :  { %576 = vsyncpa [#allocation5], 1 }
  0xef   :  { %578 = vsyncpa [#allocation5 + $0x1], 1 }

</bundles_post_ra>
